<compile_context>
chip_gen: v6e
topology: v6e:2x2x1
jax: 0.10.0
libtpu: 0.0.40
codegen_flags: <defaults>
</compile_context>

<pallas_src>
import jax
import jax.numpy as jnp
from jax.experimental import pallas as pl
from jax.experimental.pallas import tpu as pltpu

_LANE = 128
_SUBLANE = 8
_TARGET_BLOCK_BYTES = 4 * 1024 * 1024   # ~4 MiB per block; 2 bufs in + 2 out
                                        # = 16 MiB, within default scoped VMEM
_MIN_GRID_STEPS = 8                     # keep megacore-splittable on v7x


def _rezero_kernel(alpha_ref, x_ref, o_ref):
    # alpha_ref: (1, 1) float32 scalar in SMEM; x_ref/o_ref: VMEM tiles.
    a = alpha_ref[0, 0]                               # f32 scalar
    o_ref[...] = (a * x_ref[...]).astype(o_ref.dtype)  # compute in f32, cast at store


def rezero(x: jax.Array, alpha: jax.Array) -> jax.Array:
    """alpha * x with alpha a scalar parameter (shape (1,)), like torch Rezero."""
    orig_shape = x.shape
    dtype = x.dtype
    n = x.size

    flat = x.reshape(-1)

    # Choose the widest lane-dense column count that divides n (no pad/copy).
    cols = None
    for c in (1024, 512, 256, _LANE):
        if n % c == 0:
            cols = c
            break

    padded = False
    if cols is None:
        # Odd element count: pad to a multiple of 128 lanes (rare path).
        cols = _LANE
        n_total = pl.cdiv(n, cols) * cols
        flat = jnp.pad(flat, (0, n_total - n))
        padded = True
    else:
        n_total = n

    rows = n_total // cols
    x2d = flat.reshape(rows, cols)

    # Fixed tile: ~_TARGET_BLOCK_BYTES, rounded to a multiple of 8 sublanes,
    # but no bigger than needed to give ~_MIN_GRID_STEPS grid steps.
    itemsize = jnp.dtype(dtype).itemsize
    cap_rows = max(_SUBLANE, (_TARGET_BLOCK_BYTES // (cols * itemsize)) // _SUBLANE * _SUBLANE)
    even_rows = max(_SUBLANE, pl.cdiv(pl.cdiv(rows, _MIN_GRID_STEPS), _SUBLANE) * _SUBLANE)
    tile_rows = min(cap_rows, even_rows)
    if tile_rows >= rows:
        tile_rows = rows  # full extent is always a legal block shape

    grid = (pl.cdiv(rows, tile_rows),)  # ragged last block is masked by Pallas

    alpha_smem = alpha.reshape(1, 1).astype(jnp.float32)

    out2d = pl.pallas_call(
        _rezero_kernel,
        out_shape=jax.ShapeDtypeStruct((rows, cols), dtype),
        grid=grid,
        in_specs=[
            pl.BlockSpec(memory_space=pltpu.SMEM),          # alpha scalar (f32)
            pl.BlockSpec((tile_rows, cols), lambda i: (i, 0)),
        ],
        out_specs=pl.BlockSpec((tile_rows, cols), lambda i: (i, 0)),
        compiler_params=pltpu.CompilerParams(
            dimension_semantics=("parallel",)
        ),
    )(alpha_smem, x2d)

    out = out2d.reshape(-1)
    if padded:
        out = out[:n]
    return out.reshape(orig_shape)


if __name__ == "__main__":
    key = jax.random.PRNGKey(0)

    # NCHW input, small shape (batch=2, channels=4, spatial=16).
    x = jax.random.normal(key, (2, 4, 16, 16), dtype=jnp.float32)

    # Parameter init matches torch.zeros(size=(1,)).
    alpha = jnp.zeros((1,), dtype=jnp.float32)
    out = jax.block_until_ready(rezero(x, alpha))
    assert out.shape == x.shape and out.dtype == x.dtype
    assert jnp.allclose(out, alpha[0] * x)

    # Non-zero alpha path.
    alpha2 = jnp.array([0.37], dtype=jnp.float32)
    out2 = jax.block_until_ready(rezero(x, alpha2))
    assert jnp.allclose(out2, alpha2[0] * x, atol=1e-6)

    # bf16 input: multiply in f32, cast at store.
    x_bf16 = x.astype(jnp.bfloat16)
    out3 = jax.block_until_ready(rezero(x_bf16, alpha2))
    ref3 = (alpha2[0] * x_bf16.astype(jnp.float32)).astype(jnp.bfloat16)
    assert out3.dtype == jnp.bfloat16
    assert jnp.allclose(out3.astype(jnp.float32), ref3.astype(jnp.float32), atol=1e-2)

    # Odd element count exercises the (rare) pad fallback path.
    x_odd = jax.random.normal(jax.random.PRNGKey(1), (3, 5, 7), dtype=jnp.float32)
    out4 = jax.block_until_ready(rezero(x_odd, alpha2))
    assert out4.shape == x_odd.shape
    assert jnp.allclose(out4, alpha2[0] * x_odd, atol=1e-6)

    print("KERNEL_OK")
</pallas_src>

<mosaic_0001>
module attributes {stable_mosaic.version = 11 : i64} {
  func.func @_rezero_kernel(%arg0: i32, %arg1: memref<1x1xf32, #tpu.memory_space<smem>>, %arg2: memref<2x1024xf32, #tpu.memory_space<vmem>>, %arg3: memref<2x1024xf32, #tpu.memory_space<vmem>>) attributes {dimension_semantics = [#tpu.dimension_semantics<parallel>], iteration_bounds = array<i64: 1>, scalar_prefetch = 0 : i64, scratch_operands = 0 : i64, tpu.core_type = #tpu.core_type<tc>, window_params = [{transform_indices = @transform_0, window_bounds = array<i64: 1, 1>}, {transform_indices = @transform_1, window_bounds = array<i64: 2, 1024>}, {transform_indices = @transform_2, window_bounds = array<i64: 2, 1024>}]} {
    %c0 = arith.constant 0 : index
    %c0_0 = arith.constant 0 : index
    %0 = memref.load %arg1[%c0, %c0_0] : memref<1x1xf32, #tpu.memory_space<smem>>
    %c0_1 = arith.constant 0 : index
    %c0_2 = arith.constant 0 : index
    %1 = vector.load %arg2[%c0_1, %c0_2] : memref<2x1024xf32, #tpu.memory_space<vmem>>, vector<2x1024xf32>
    %2 = vector.broadcast %0 : f32 to vector<2x1024xf32>
    %3 = arith.mulf %2, %1 : vector<2x1024xf32>
    %c0_3 = arith.constant 0 : index
    %c0_4 = arith.constant 0 : index
    %4 = vector.load %arg3[%c0_3, %c0_4] : memref<2x1024xf32, #tpu.memory_space<vmem>>, vector<2x1024xf32>
    tpu.vector_store %arg3[%c0_3, %c0_4], %3 {strides = array<i32>} : memref<2x1024xf32, #tpu.memory_space<vmem>>, vector<2x1024xf32>,
    return
  }
  func.func @transform_0(%arg0: i32) -> (i32, i32) {
    %c0_i32 = arith.constant 0 : i32
    %c0_i32_0 = arith.constant 0 : i32
    %c0_i32_1 = arith.constant 0 : i32
    return %c0_i32, %c0_i32_0 : i32, i32
  }
  func.func @transform_1(%arg0: i32) -> (i32, i32) {
    %c0_i32 = arith.constant 0 : i32
    %c0_i32_0 = arith.constant 0 : i32
    return %arg0, %c0_i32 : i32, i32
  }
  func.func @transform_2(%arg0: i32) -> (i32, i32) {
    %c0_i32 = arith.constant 0 : i32
    %c0_i32_0 = arith.constant 0 : i32
    return %arg0, %c0_i32 : i32, i32
  }
}

</mosaic_0001>

<bundles_post_ra>
// kernel: tpu_custom_call.1
= control target key start
LH: loop header
LB: loop body
LE: loop exit
PB: predicated region body
PF: predicated region fallthrough
CT: control target
= control target key end

     0   :  { %8 = vsyncpa [#allocation4], 0  ;;  %s120_s0 = inlined_call_operand.<no memory space> [shape: f32[1,1], index: 0, kind: input, shape index: {}]   ;;  %s121_s1 = inlined_call_operand.hbm [shape: f32[2,1024], index: 1, kind: input, shape index: {}]   ;;  %s122_s2 = inlined_call_operand.hbm [shape: f32[2,1024], index: 2, kind: output, shape index: {}]  }
   0x1   :  { %9 = vsyncpa [#allocation5], 0  ;;  %s94_s9 = smov [#allocation3]  }
   0x2   :  { %s18_s10 = sshll.u32 %s94_s9, 4  ;;  %s19_s10 = int_to_ptr.vmem [resolvable:$true] %s18_s10 }
   0x3   :  { %s58_s11 = scalar_lea.vmem %s19_s10, 256  ;;  %p63_p1 = scmp.lt.s32.totalorder %s19_s10, %s19_s10 }
   0x4   :  { %p59_p0 = scmp.ne.s32.totalorder %s19_s10, %s58_s11  ;;  %p64_p2 = scmp.lt.s32.totalorder %s58_s11, %s58_s11 }
   0x6   :  { %p65_p3 = por %p64_p2, %p63_p1 }
   0x8   :  { %p66_p4 = pnand %p65_p3, %p59_p0 }
   0xa   :  { %69 = shalt.err (!%p66_p4)
}
   0xb   :  { %21 = dma.hbm_to_vmem [thread:$0]  %s121_s1, 256, %s19_s10, [#allocation4]  }
   0xc   :  { %90 = dma.done.wait [#allocation4], 256  }
   0xd   :  { %91 = vsyncadd [#allocation4], 4294967040  ;;  %v28_v0 = vstv %s120_s0  ;;  %s95_s16 = smov [#allocation6]   ;;  %v26_v1 = vld [vmem:[#allocation3] sm:$0xff]  ;;  %v27_v2 = vld [vmem:[#allocation3 + $0x8] sm:$0xff] }
   0xe   :  { %s39_s17 = sshll.u32 %s95_s16, 4  ;;  %v29_v3 = vmul.f32 %v28_v0, %v26_v1  ;;  %v30_v4 = vmul.f32 %v28_v0, %v27_v2  ;;  %s40_s17 = int_to_ptr.vmem [resolvable:$true] %s39_s17 }
   0xf   :  { %s70_s18 = scalar_lea.vmem %s40_s17, 256  ;;  %p75_p6 = scmp.lt.s32.totalorder %s40_s17, %s40_s17 }
  0x10   :  { %31 = vst [vmem:[#allocation6] sm:$0xff] %v29_v3  ;;  %32 = vst [vmem:[#allocation6 + $0x8] sm:$0xff] %v30_v4  ;;  %p71_p5 = scmp.ne.s32.totalorder %s40_s17, %s70_s18  ;;  %p76_p7 = scmp.lt.s32.totalorder %s70_s18, %s70_s18 }
  0x12   :  { %p77_p8 = por %p76_p7, %p75_p6 }
  0x14   :  { %p78_p9 = pnand %p77_p8, %p71_p5 }
  0x16   :  { %81 = shalt.err (!%p78_p9)
}
  0x17   :  { %42 = dma.vmem_to_hbm [thread:$0]  %s40_s17, 256, %s122_s2, [#allocation5]  }
  0x18   :  { %92 = dma.done.wait [#allocation5], 256  }
  0x19   :  { %93 = vsyncadd [#allocation5], 4294967040 }
  0x1a   :  { %46 = vsyncpa [#allocation4], 1 }
  0x1b   :  { %47 = vsyncpa [#allocation5], 1 }

</bundles_post_ra>
